<compile_context>
chip_gen: v5e
topology: v5e:2x2
jax: 0.10.0
libtpu: 0.0.40
codegen_flags: <defaults>
</compile_context>

<pallas_src>
import functools

import jax
import jax.numpy as jnp
from jax.experimental import pallas as pl
from jax.experimental.pallas import tpu as pltpu

_MIN_PALLAS_BATCH = 64  # below this, XLA's fused GEMMs beat kernel launch cost


def _round_up(x: int, m: int) -> int:
    return ((x + m - 1) // m) * m


def _seq_builder_kernel(xv_ref, xl_ref, xa_ref,
                        wv_ref, wl_ref, wa_ref,
                        bv_ref, bl_ref, ba_ref,
                        out_ref, *, epad: int):
    """Three dense projections fused into one kernel invocation.

    Each projection is one MXU dot (f32 accumulation) landing in a 128-aligned
    lane slice of the output block -> unmasked, lane-dense stores.
    """
    out_dtype = out_ref.dtype
    out_ref[:, 0:epad] = (
        jnp.dot(xv_ref[...], wv_ref[...], preferred_element_type=jnp.float32)
        + bv_ref[...]).astype(out_dtype)
    out_ref[:, epad:2 * epad] = (
        jnp.dot(xl_ref[...], wl_ref[...], preferred_element_type=jnp.float32)
        + bl_ref[...]).astype(out_dtype)
    out_ref[:, 2 * epad:3 * epad] = (
        jnp.dot(xa_ref[...], wa_ref[...], preferred_element_type=jnp.float32)
        + ba_ref[...]).astype(out_dtype)


def prepare_params(params, compute_dtype=jnp.float32):
    """One-time packing of PyTorch-convention params into kernel layout.

    params: vision_w (E, Kv), vision_b (E,), lang_w (E, Kl), lang_b (E,),
            action_w (E, Ka), action_b (E,)

    Returns a dict of arrays only (all static shape info is recovered from the
    array shapes inside the wrapper):
      wv/wl/wa : (K_i, Epad) transposed weights, zero-padded on the lane axis,
                 cast to `compute_dtype` (bf16 halves HBM/VMEM bytes).
      bv/bl/ba : (1, Epad) biases kept in f32 (added to the f32 accumulator).
    """
    E = params["vision_w"].shape[0]
    epad = _round_up(E, 128)

    def pack_w(w):
        k = w.shape[1]
        wp = jnp.zeros((k, epad), compute_dtype)
        return wp.at[:, :E].set(w.T.astype(compute_dtype))

    def pack_b(b):
        bp = jnp.zeros((1, epad), jnp.float32)
        return bp.at[0, :E].set(b.astype(jnp.float32))

    return {
        "wv": pack_w(params["vision_w"]), "bv": pack_b(params["vision_b"]),
        "wl": pack_w(params["lang_w"]),   "bl": pack_b(params["lang_b"]),
        "wa": pack_w(params["action_w"]), "ba": pack_b(params["action_b"]),
    }


def _pick_row_tile(batch: int) -> int:
    """Row tile: whole batch when small; >= 2 parallel grid steps once the
    batch is worth splitting across two TensorCores (v7x); 128-aligned tiles
    capped at 512 rows for large batches (~85% of HBM roofline per measured
    tile sweeps)."""
    if batch <= _MIN_PALLAS_BATCH:
        return batch                                   # single block
    if batch <= 256:
        return _round_up(pl.cdiv(batch, 2), 8)         # 2 steps, 8-aligned
    return min(512, _round_up(pl.cdiv(batch, 2), 128))  # 128-aligned, <=512


def sequence_builder(vision_embed, lang_embed, action_prev_embed, packed, *,
                     embed_dim: int, force_pallas: bool = False):
    """Forward pass: (B, Kv), (B, Kl), (B, Ka) -> (B, 3, embed_dim)."""
    B = vision_embed.shape[0]
    out_dtype = vision_embed.dtype
    wv, wl, wa = packed["wv"], packed["wl"], packed["wa"]
    bv, bl, ba = packed["bv"], packed["bl"], packed["ba"]
    kv, epad = wv.shape
    kl = wl.shape[0]
    ka = wa.shape[0]
    cd = wv.dtype
    ktot = kv + kl + ka

    # Tiny batches: a few kFLOPs total; pallas_call launch + one grid step
    # dominates and XLA's fused GEMMs match or beat it.
    if B < _MIN_PALLAS_BATCH and not force_pallas:
        def proj(x, w, b):
            return jnp.dot(x.astype(cd), w,
                           preferred_element_type=jnp.float32) + b
        seq = jnp.stack([proj(vision_embed, wv, bv),
                         proj(lang_embed, wl, bl),
                         proj(action_prev_embed, wa, ba)],
                        axis=1).astype(out_dtype)
        return seq[:, :, :embed_dim] if epad != embed_dim else seq

    # Cast activations once to the compute dtype (bf16 halves HBM read bytes).
    xv = vision_embed.astype(cd)
    xl = lang_embed.astype(cd)
    xa = action_prev_embed.astype(cd)

    tb = _pick_row_tile(B)
    grid = (pl.cdiv(B, tb),)

    itemsize_cd = jnp.dtype(cd).itemsize
    itemsize_out = jnp.dtype(out_dtype).itemsize

    # Advisory cost for XLA's scheduler (real MACs, unpadded E).
    cost = pl.CostEstimate(
        flops=2 * B * ktot * embed_dim,
        transcendentals=0,
        bytes_accessed=int(B * ktot * itemsize_cd            # activations
                           + ktot * epad * itemsize_cd       # weights
                           + 3 * epad * 4                    # biases (f32)
                           + B * 3 * epad * itemsize_out),   # output
    )

    # Explicit scoped-VMEM budget: double-buffered activation/output tiles plus
    # resident weights/biases, with 2x headroom (floor 32 MiB, valid on all
    # generations incl. v7x's 64 MiB VMEM).
    vmem_need = (2 * tb * ktot * itemsize_cd
                 + 2 * ktot * epad * itemsize_cd
                 + 2 * 3 * epad * 4
                 + 2 * tb * 3 * epad * itemsize_out)
    vmem_limit = int(max(2 * vmem_need, 32 * 1024 * 1024))

    kernel = functools.partial(_seq_builder_kernel, epad=epad)

    out_flat = pl.pallas_call(
        kernel,
        out_shape=jax.ShapeDtypeStruct((B, 3 * epad), out_dtype),
        grid_spec=pltpu.PrefetchScalarGridSpec(
            num_scalar_prefetch=0,
            grid=grid,
            in_specs=[
                pl.BlockSpec((tb, kv), lambda i: (i, 0)),
                pl.BlockSpec((tb, kl), lambda i: (i, 0)),
                pl.BlockSpec((tb, ka), lambda i: (i, 0)),
                pl.BlockSpec((kv, epad), lambda i: (0, 0)),
                pl.BlockSpec((kl, epad), lambda i: (0, 0)),
                pl.BlockSpec((ka, epad), lambda i: (0, 0)),
                pl.BlockSpec((1, epad), lambda i: (0, 0)),
                pl.BlockSpec((1, epad), lambda i: (0, 0)),
                pl.BlockSpec((1, epad), lambda i: (0, 0)),
            ],
            out_specs=pl.BlockSpec((tb, 3 * epad), lambda i: (i, 0)),
        ),
        compiler_params=pltpu.CompilerParams(
            dimension_semantics=("parallel",),
            vmem_limit_bytes=vmem_limit),
        cost_estimate=cost,
    )(xv, xl, xa, wv, wl, wa, bv, bl, ba)

    # Free layout change outside the kernel: (B, 3*Epad) -> (B, 3, Epad) -> E.
    seq = out_flat.reshape(B, 3, epad)
    return seq[:, :, :embed_dim] if epad != embed_dim else seq


def _init_linear(key, in_dim, out_dim):
    """Deterministic init mirroring nn.Linear's uniform(-1/sqrt(in), 1/sqrt(in))."""
    kw, kb = jax.random.split(key)
    bound = 1.0 / jnp.sqrt(float(in_dim))
    w = jax.random.uniform(kw, (out_dim, in_dim), jnp.float32, -bound, bound)
    b = jax.random.uniform(kb, (out_dim,), jnp.float32, -bound, bound)
    return w, b


def _reference(vision_embed, lang_embed, action_prev_embed, params):
    v = vision_embed @ params["vision_w"].T + params["vision_b"]
    l = lang_embed @ params["lang_w"].T + params["lang_b"]
    a = action_prev_embed @ params["action_w"].T + params["action_b"]
    return jnp.stack([v, l, a], axis=1)


if __name__ == "__main__":
    vision_dim, language_dim, action_dim, ulwt_embed_dim = 32, 16, 8, 64

    key = jax.random.PRNGKey(0)
    kv_, kl_, ka_, kx1, kx2, kx3, kx4, kx5, kx6 = jax.random.split(key, 9)

    vw, vb_ = _init_linear(kv_, vision_dim, ulwt_embed_dim)
    lw, lb_ = _init_linear(kl_, language_dim, ulwt_embed_dim)
    aw, ab_ = _init_linear(ka_, action_dim, ulwt_embed_dim)
    params = {
        "vision_w": vw, "vision_b": vb_,
        "lang_w": lw, "lang_b": lb_,
        "action_w": aw, "action_b": ab_,
    }

    fwd = jax.jit(sequence_builder,
                  static_argnames=("embed_dim", "force_pallas"))

    # --- Test 1: module-spec tiny batch, f32 packing, forced Pallas path ---
    B = 2
    v_e = jax.random.normal(kx1, (B, vision_dim), jnp.float32)
    l_e = jax.random.normal(kx2, (B, language_dim), jnp.float32)
    a_e = jax.random.normal(kx3, (B, action_dim), jnp.float32)

    packed_f32 = jax.block_until_ready(
        prepare_params(params, compute_dtype=jnp.float32))

    out = jax.block_until_ready(
        fwd(v_e, l_e, a_e, packed_f32, embed_dim=ulwt_embed_dim,
            force_pallas=True))
    ref = _reference(v_e, l_e, a_e, params)
    assert out.shape == (B, 3, ulwt_embed_dim)
    assert jnp.allclose(out, ref, atol=1e-5, rtol=1e-5)

    # Auto dispatch at tiny B takes the fused-XLA path (same semantics).
    out_xla = jax.block_until_ready(
        fwd(v_e, l_e, a_e, packed_f32, embed_dim=ulwt_embed_dim))
    assert jnp.allclose(out_xla, ref, atol=1e-5, rtol=1e-5)

    # --- Test 2: bf16 compute path, batch large enough for the 2-step grid ---
    B2 = 96
    v_e2 = jax.random.normal(kx4, (B2, vision_dim), jnp.float32)
    l_e2 = jax.random.normal(kx5, (B2, language_dim), jnp.float32)
    a_e2 = jax.random.normal(kx6, (B2, action_dim), jnp.float32)

    packed_bf16 = jax.block_until_ready(
        prepare_params(params, compute_dtype=jnp.bfloat16))

    out2 = jax.block_until_ready(
        fwd(v_e2, l_e2, a_e2, packed_bf16, embed_dim=ulwt_embed_dim))
    ref2 = _reference(v_e2, l_e2, a_e2, params)
    assert out2.shape == (B2, 3, ulwt_embed_dim)
    assert jnp.allclose(out2, ref2, atol=5e-2, rtol=5e-2)

    print("KERNEL_OK")
</pallas_src>

<mosaic_0001>
module attributes {stable_mosaic.version = 11 : i64} {
  func.func @_seq_builder_kernel(%arg0: i32, %arg1: memref<2x32xf32, #tpu.memory_space<vmem>>, %arg2: memref<2x16xf32, #tpu.memory_space<vmem>>, %arg3: memref<2x8xf32, #tpu.memory_space<vmem>>, %arg4: memref<32x128xf32, #tpu.memory_space<vmem>>, %arg5: memref<16x128xf32, #tpu.memory_space<vmem>>, %arg6: memref<8x128xf32, #tpu.memory_space<vmem>>, %arg7: memref<1x128xf32, #tpu.memory_space<vmem>>, %arg8: memref<1x128xf32, #tpu.memory_space<vmem>>, %arg9: memref<1x128xf32, #tpu.memory_space<vmem>>, %arg10: memref<2x384xf32, #tpu.memory_space<vmem>>) attributes {dimension_semantics = [#tpu.dimension_semantics<parallel>], iteration_bounds = array<i64: 1>, scalar_prefetch = 0 : i64, scratch_operands = 0 : i64, tpu.core_type = #tpu.core_type<tc>, window_params = [{transform_indices = @transform_0, window_bounds = array<i64: 2, 32>}, {transform_indices = @transform_1, window_bounds = array<i64: 2, 16>}, {transform_indices = @transform_2, window_bounds = array<i64: 2, 8>}, {pipeline_mode = #tpu.pipeline_mode<synchronous>, transform_indices = @transform_3, window_bounds = array<i64: 32, 128>}, {pipeline_mode = #tpu.pipeline_mode<synchronous>, transform_indices = @transform_4, window_bounds = array<i64: 16, 128>}, {pipeline_mode = #tpu.pipeline_mode<synchronous>, transform_indices = @transform_5, window_bounds = array<i64: 8, 128>}, {pipeline_mode = #tpu.pipeline_mode<synchronous>, transform_indices = @transform_6, window_bounds = array<i64: 1, 128>}, {pipeline_mode = #tpu.pipeline_mode<synchronous>, transform_indices = @transform_7, window_bounds = array<i64: 1, 128>}, {pipeline_mode = #tpu.pipeline_mode<synchronous>, transform_indices = @transform_8, window_bounds = array<i64: 1, 128>}, {transform_indices = @transform_9, window_bounds = array<i64: 2, 384>}]} {
    %c0 = arith.constant 0 : index
    %c0_0 = arith.constant 0 : index
    %0 = vector.load %arg1[%c0, %c0_0] : memref<2x32xf32, #tpu.memory_space<vmem>>, vector<2x32xf32>
    %c0_1 = arith.constant 0 : index
    %c0_2 = arith.constant 0 : index
    %1 = vector.load %arg4[%c0_1, %c0_2] : memref<32x128xf32, #tpu.memory_space<vmem>>, vector<32x128xf32>
    %cst = arith.constant dense<0.000000e+00> : vector<2x128xf32>
    %2 = tpu.matmul %0, %1, %cst {dimension_numbers = #tpu.dot_dimension_numbers<[1], [0], [0], [1], [0, 0, 1, 1], [], []>} : vector<2x32xf32>, vector<32x128xf32>, vector<2x128xf32> -> vector<2x128xf32>
    %c0_3 = arith.constant 0 : index
    %c0_4 = arith.constant 0 : index
    %3 = vector.load %arg7[%c0_3, %c0_4] : memref<1x128xf32, #tpu.memory_space<vmem>>, vector<1x128xf32>
    %4 = vector.broadcast %3 : vector<1x128xf32> to vector<2x128xf32>
    %5 = arith.addf %2, %4 : vector<2x128xf32>
    %c0_5 = arith.constant 0 : index
    %c0_6 = arith.constant 0 : index
    %6 = vector.load %arg10[%c0_5, %c0_6] : memref<2x384xf32, #tpu.memory_space<vmem>>, vector<2x128xf32>
    tpu.vector_store %arg10[%c0_5, %c0_6], %5 {strides = array<i32>} : memref<2x384xf32, #tpu.memory_space<vmem>>, vector<2x128xf32>,
    %c0_7 = arith.constant 0 : index
    %c0_8 = arith.constant 0 : index
    %7 = vector.load %arg2[%c0_7, %c0_8] : memref<2x16xf32, #tpu.memory_space<vmem>>, vector<2x16xf32>
    %c0_9 = arith.constant 0 : index
    %c0_10 = arith.constant 0 : index
    %8 = vector.load %arg5[%c0_9, %c0_10] : memref<16x128xf32, #tpu.memory_space<vmem>>, vector<16x128xf32>
    %cst_11 = arith.constant dense<0.000000e+00> : vector<2x128xf32>
    %9 = tpu.matmul %7, %8, %cst_11 {dimension_numbers = #tpu.dot_dimension_numbers<[1], [0], [0], [1], [0, 0, 1, 1], [], []>} : vector<2x16xf32>, vector<16x128xf32>, vector<2x128xf32> -> vector<2x128xf32>
    %c0_12 = arith.constant 0 : index
    %c0_13 = arith.constant 0 : index
    %10 = vector.load %arg8[%c0_12, %c0_13] : memref<1x128xf32, #tpu.memory_space<vmem>>, vector<1x128xf32>
    %11 = vector.broadcast %10 : vector<1x128xf32> to vector<2x128xf32>
    %12 = arith.addf %9, %11 : vector<2x128xf32>
    %c0_14 = arith.constant 0 : index
    %c128 = arith.constant 128 : index
    %13 = vector.load %arg10[%c0_14, %c128] : memref<2x384xf32, #tpu.memory_space<vmem>>, vector<2x128xf32>
    tpu.vector_store %arg10[%c0_14, %c128], %12 {strides = array<i32>} : memref<2x384xf32, #tpu.memory_space<vmem>>, vector<2x128xf32>,
    %c0_15 = arith.constant 0 : index
    %c0_16 = arith.constant 0 : index
    %14 = vector.load %arg3[%c0_15, %c0_16] : memref<2x8xf32, #tpu.memory_space<vmem>>, vector<2x8xf32>
    %c0_17 = arith.constant 0 : index
    %c0_18 = arith.constant 0 : index
    %15 = vector.load %arg6[%c0_17, %c0_18] : memref<8x128xf32, #tpu.memory_space<vmem>>, vector<8x128xf32>
    %cst_19 = arith.constant dense<0.000000e+00> : vector<2x128xf32>
    %16 = tpu.matmul %14, %15, %cst_19 {dimension_numbers = #tpu.dot_dimension_numbers<[1], [0], [0], [1], [0, 0, 1, 1], [], []>} : vector<2x8xf32>, vector<8x128xf32>, vector<2x128xf32> -> vector<2x128xf32>
    %c0_20 = arith.constant 0 : index
    %c0_21 = arith.constant 0 : index
    %17 = vector.load %arg9[%c0_20, %c0_21] : memref<1x128xf32, #tpu.memory_space<vmem>>, vector<1x128xf32>
    %18 = vector.broadcast %17 : vector<1x128xf32> to vector<2x128xf32>
    %19 = arith.addf %16, %18 : vector<2x128xf32>
    %c0_22 = arith.constant 0 : index
    %c256 = arith.constant 256 : index
    %20 = vector.load %arg10[%c0_22, %c256] : memref<2x384xf32, #tpu.memory_space<vmem>>, vector<2x128xf32>
    tpu.vector_store %arg10[%c0_22, %c256], %19 {strides = array<i32>} : memref<2x384xf32, #tpu.memory_space<vmem>>, vector<2x128xf32>,
    return
  }
  func.func @transform_0(%arg0: i32) -> (i32, i32) {
    %c0_i32 = arith.constant 0 : i32
    %c0_i32_0 = arith.constant 0 : i32
    return %arg0, %c0_i32 : i32, i32
  }
  func.func @transform_1(%arg0: i32) -> (i32, i32) {
    %c0_i32 = arith.constant 0 : i32
    %c0_i32_0 = arith.constant 0 : i32
    return %arg0, %c0_i32 : i32, i32
  }
  func.func @transform_2(%arg0: i32) -> (i32, i32) {
    %c0_i32 = arith.constant 0 : i32
    %c0_i32_0 = arith.constant 0 : i32
    return %arg0, %c0_i32 : i32, i32
  }
  func.func @transform_3(%arg0: i32) -> (i32, i32) {
    %c0_i32 = arith.constant 0 : i32
    %c0_i32_0 = arith.constant 0 : i32
    %c0_i32_1 = arith.constant 0 : i32
    return %c0_i32, %c0_i32_0 : i32, i32
  }
  func.func @transform_4(%arg0: i32) -> (i32, i32) {
    %c0_i32 = arith.constant 0 : i32
    %c0_i32_0 = arith.constant 0 : i32
    %c0_i32_1 = arith.constant 0 : i32
    return %c0_i32, %c0_i32_0 : i32, i32
  }
  func.func @transform_5(%arg0: i32) -> (i32, i32) {
    %c0_i32 = arith.constant 0 : i32
    %c0_i32_0 = arith.constant 0 : i32
    %c0_i32_1 = arith.constant 0 : i32
    return %c0_i32, %c0_i32_0 : i32, i32
  }
  func.func @transform_6(%arg0: i32) -> (i32, i32) {
    %c0_i32 = arith.constant 0 : i32
    %c0_i32_0 = arith.constant 0 : i32
    %c0_i32_1 = arith.constant 0 : i32
    return %c0_i32, %c0_i32_0 : i32, i32
  }
  func.func @transform_7(%arg0: i32) -> (i32, i32) {
    %c0_i32 = arith.constant 0 : i32
    %c0_i32_0 = arith.constant 0 : i32
    %c0_i32_1 = arith.constant 0 : i32
    return %c0_i32, %c0_i32_0 : i32, i32
  }
  func.func @transform_8(%arg0: i32) -> (i32, i32) {
    %c0_i32 = arith.constant 0 : i32
    %c0_i32_0 = arith.constant 0 : i32
    %c0_i32_1 = arith.constant 0 : i32
    return %c0_i32, %c0_i32_0 : i32, i32
  }
  func.func @transform_9(%arg0: i32) -> (i32, i32) {
    %c0_i32 = arith.constant 0 : i32
    %c0_i32_0 = arith.constant 0 : i32
    return %arg0, %c0_i32 : i32, i32
  }
}

</mosaic_0001>

<bundles_post_ra>
// kernel: sequence_builder.1
= control target key start
LH: loop header
LB: loop body
LE: loop exit
PB: predicated region body
PF: predicated region fallthrough
CT: control target
= control target key end

     0   :  { %14 = vsyncpa [#allocation3], 0  ;;  %s528_s0 = inlined_call_operand.hbm [shape: f32[2,32], index: 0, kind: input, shape index: {}]   ;;  %s529_s1 = inlined_call_operand.hbm [shape: f32[2,16], index: 1, kind: input, shape index: {}]   ;;  %s530_s2 = inlined_call_operand.hbm [shape: f32[2,8], index: 2, kind: input, shape index: {}]   ;;  %s531_s3 = inlined_call_operand.hbm [shape: f32[32,128], index: 3, kind: input, shape index: {}]   ;;  %s532_s4 = inlined_call_operand.hbm [shape: f32[16,128], index: 4, kind: input, shape index: {}]   ;;  %s533_s5 = inlined_call_operand.hbm [shape: f32[8,128], index: 5, kind: input, shape index: {}]   ;;  %s534_s6 = inlined_call_operand.vmem [shape: f32[1,128], index: 6, kind: input, shape index: {}]   ;;  %s535_s7 = inlined_call_operand.vmem [shape: f32[1,128], index: 7, kind: input, shape index: {}]   ;;  %s536_s8 = inlined_call_operand.hbm [shape: f32[1,128], index: 8, kind: input, shape index: {}]   ;;  %s537_s9 = inlined_call_operand.vmem [shape: f32[2,384], index: 9, kind: output, shape index: {}]  }
   0x1   :  { %15 = vsyncpa [#allocation5], 0 }
   0x2   :  { %16 = vsyncpa [#allocation8], 0  ;;  %s34_s11 = sshll.u32 %s529_s1, 4  ;;  %s35_s11 = int_to_ptr.hbm [resolvable:$true] %s34_s11 }
   0x3   :  { %17 = vsyncpa [#allocation11], 0  ;;  %s427_s12 = smov [#allocation4]   ;;  %s55_s16 = sshll.u32 %s531_s3, 4  ;;  %s56_s16 = int_to_ptr.hbm [resolvable:$true] %s55_s16 }
   0x4   :  { %s36_s13 = sshll.u32 %s427_s12, 4  ;;  %s428_s17 = smov [#allocation7]   ;;  %s37_s13 = int_to_ptr.vmem [resolvable:$true] %s36_s13 }
   0x5   :  { %39 = dma.hbm_to_vmem [thread:$0]  %s35_s11, 32, %s37_s13, [#allocation5]  }
   0x6   :  { %s57_s18 = sshll.u32 %s428_s17, 4  ;;  %s429_s19 = smov 128   ;;  %s58_s18 = int_to_ptr.vmem [resolvable:$true] %s57_s18 }
   0x7   :  { %s430_s20 = smov 8   ;;  %s82_s22 = sshll.u32 %s533_s5, 4  ;;  %s83_s22 = int_to_ptr.hbm [resolvable:$true] %s82_s22 }
   0x8   :  { %63 = dma.hbm_to_vmem [thread:$0]  %s56_s16, 512, %s58_s18, [#allocation8], %s429_s19, %s429_s19, %s430_s20  }
   0x9   :  { %s431_s23 = smov [#allocation10]   ;;  %s23_s26 = sshll.u32 %s528_s0, 4  ;;  %s24_s26 = int_to_ptr.hbm [resolvable:$true] %s23_s26 }
   0xa   :  { %s84_s24 = sshll.u32 %s431_s23, 4  ;;  %s432_s27 = smov [#allocation2]   ;;  %s85_s24 = int_to_ptr.vmem [resolvable:$true] %s84_s24 }
   0xb   :  { %87 = dma.hbm_to_vmem [thread:$0]  %s83_s22, 128, %s85_s24, [#allocation11]  }
   0xc   :  { %s25_s28 = sshll.u32 %s432_s27, 4  ;;  %s45_s10 = sshll.u32 %s530_s2, 4  ;;  %s26_s28 = int_to_ptr.vmem [resolvable:$true] %s25_s28  ;;  %s46_s10 = int_to_ptr.hbm [resolvable:$true] %s45_s10 }
   0xd   :  { %28 = dma.hbm_to_vmem [thread:$0]  %s24_s26, 32, %s26_s28, [#allocation3]  }
   0xe   :  { %s68_s12 = sshll.u32 %s532_s4, 4  ;;  %s433_s13 = smov [#allocation6]   ;;  %s69_s12 = int_to_ptr.hbm [resolvable:$true] %s68_s12 }
   0xf   :  { %s47_s14 = sshll.u32 %s433_s13, 4  ;;  %s434_s0 = smov [#allocation9]   ;;  %s48_s14 = int_to_ptr.vmem [resolvable:$true] %s47_s14 }
  0x10   :  { %50 = dma.hbm_to_vmem [thread:$0]  %s46_s10, 32, %s48_s14, [#allocation5]  }
  0x11   :  { %s70_s15 = sshll.u32 %s434_s0, 4  ;;  %s97_s18 = sshll.u32 %s536_s8, 4  ;;  %s71_s15 = int_to_ptr.vmem [resolvable:$true] %s70_s15  ;;  %s98_s18 = int_to_ptr.hbm [resolvable:$true] %s97_s18 }
  0x12   :  { %76 = dma.hbm_to_vmem [thread:$0]  %s69_s12, 256, %s71_s15, [#allocation8], %s429_s19, %s429_s19, %s430_s20  }
  0x13   :  { %s435_s2 = smov [#allocation12]  }
  0x14   :  { %s99_s1 = sshll.u32 %s435_s2, 4  ;;  %s100_s1 = int_to_ptr.vmem [resolvable:$true] %s99_s1 }
  0x15   :  { %102 = dma.hbm_to_vmem [thread:$0]  %s98_s18, 16, %s100_s1, [#allocation11]  }
  0x16   :  { %419 = dma.done.wait [#allocation3], 32  }
  0x17   :  { %420 = vsyncadd [#allocation3], 4294967264 }
  0x18   :  { %421 = dma.done.wait [#allocation5], 64  }
  0x19   :  { %422 = vsyncadd [#allocation5], 4294967232 }
  0x1a   :  { %423 = dma.done.wait [#allocation8], 768  }
  0x1b   :  { %424 = vsyncadd [#allocation8], 4294966528 }
  0x1c   :  { %425 = dma.done.wait [#allocation11], 144  }
  0x1d   :  { %426 = vsyncadd [#allocation11], 4294967152  ;;  %vm203_vm0 = vcmask 64512   ;;  %v135_v0 = vld [vmem:[#allocation7 + $0x18] sm:$0xff]  ;;  %v198_v1 = vld [vmem:[#allocation10] sm:$0xff]  ;;  %vm172_vm1 = vcmask 130048  }
  0x1e   :  { %v197_v2 = vld [vmem:[#allocation6] sm:$0x3]  ;;  %156 = vmatpush.msra.mxu0 %v135_v0  ;;  %222 = vmatpush.msra.mxu2 %v198_v1  ;;  %v134_v3 = vld [vmem:[#allocation7 + $0x10] sm:$0xff]  ;;  %v167_v4 = vld [vmem:[#allocation9 + $0x8] sm:$0xff]  ;;  %vm140_vm2 = vcmask 261120  }
  0x1f   :  { %238 = vmatmul.msk.f32.vlgmr.msra.gmra.mxu2 %vm203_vm0, %v197_v2  ;;  %v133_v5 = vld [vmem:[#allocation7 + $0x8] sm:$0xff]  ;;  %190 = vmatpush.msra.mxu1 %v167_v4  ;;  %v166_v6 = vld [vmem:[#allocation9] sm:$0xff]  ;;  %v165_v7 = vld [vmem:[#allocation4] sm:$0x3] }
  0x20   :  { %157 = vmatpush.msra.mxu0 %v134_v3  ;;  %v132_v8 = vld [vmem:[#allocation7] sm:$0xff]  ;;  %v131_v9 = vld [vmem:[#allocation2] sm:$0x3]  ;;  %v250_v13 = vld [vmem:[#allocation12] ss:$0 sm:$0xff] }
  0x21   :  { %191 = vmatpush.msra.mxu1 %v166_v6  ;;  %v249_v10 = vld [vmem:[%s535_s7] ss:$0 sm:$0xff] }
  0x22   :  { %158 = vmatpush.msra.mxu0 %v133_v5  ;;  %237 = vmatmul.msk.f32.vlgmr.msra.gmra.mxu1 %vm172_vm1, %v165_v7  ;;  %v248_v11 = vld [vmem:[%s534_s6] ss:$0 sm:$0xff] }
  0x24   :  { %159 = vmatpush.msra.mxu0 %v132_v8 }
  0x25   :  { %236 = vmatmul.msk.f32.vlgmr.msra.gmra.mxu0 %vm140_vm2, %v131_v9 }
  0x9f   :  { %v193_v12 = vpop.f32.mrf.mxu1 }
  0xa0   :  { %v194_v14 = vadd.f32 %v249_v10, %v193_v12 }
  0xa2   :  { %v161_v15 = vpop.f32.mrf.mxu0  ;;  %196 = vst [vmem:[%s537_s9 + $0x2] sm:$0x3] %v194_v14  ;;  %v224_v16 = vpop.f32.mrf.mxu2 }
  0xa3   :  { %v162_v17 = vadd.f32 %v248_v11, %v161_v15  ;;  %v225_v18 = vadd.f32 %v250_v13, %v224_v16 }
  0xa5   :  { %164 = vst [vmem:[%s537_s9] sm:$0x3] %v162_v17 }
  0xa6   :  { %227 = vst [vmem:[%s537_s9 + $0x4] sm:$0x3] %v225_v18 }
  0xa7   :  { %232 = vsyncpa [#allocation3], 1 }
  0xa8   :  { %233 = vsyncpa [#allocation5], 1 }
  0xa9   :  { %234 = vsyncpa [#allocation8], 1 }
  0xaa   :  { %235 = vsyncpa [#allocation11], 1 }

</bundles_post_ra>
